<compile_context>
chip_gen: v5e
topology: v5e:2x2
jax: 0.10.0
libtpu: 0.0.40
codegen_flags: <defaults>
</compile_context>

<pallas_src>
import functools

import jax
import jax.numpy as jnp
import numpy as np
from jax import lax
from jax.experimental import pallas as pl
from jax.experimental.pallas import tpu as pltpu


def _round_up(x, m):
    return ((x + m - 1) // m) * m


def _cdiv(a, b):
    return (a + b - 1) // b


# ----------------------------------------------------------------------------
# Kernels
# ----------------------------------------------------------------------------
def _gather_kernel_vmem(idx_ref, z_ref, o_ref, *, b_tile):
    """Gather b_tile rows of the VMEM-resident table into the output block.

    idx_ref : SMEM int32[(padded_batch,)]  scalar-prefetched row indices
    z_ref   : VMEM (nsample, nrep_pad)     full table, resident across the grid
    o_ref   : VMEM (b_tile, nrep_pad)      lane/sublane-dense output block
    """
    base = pl.program_id(0) * b_tile
    # Static unroll: the store row index is static (plain masked single-sublane
    # store); only the source row offset is dynamic (dynamic-sublane load).
    for r in range(b_tile):
        row = idx_ref[base + r]
        o_ref[pl.ds(r, 1), :] = z_ref[pl.ds(row, 1), :]


def _gather_kernel_hbm(idx_ref, z_hbm, o_ref, copy_sems, *, b_tile, depth):
    """Gather b_tile rows of z (HBM) into the output block via a DMA ring.

    idx_ref   : SMEM int32[(padded_batch,)]  scalar-prefetched row indices
    z_hbm     : HBM ref (nsample, nrep_pad)  memory_space=pl.ANY, manual DMA
    o_ref     : VMEM (b_tile, nrep_pad)      output block
    copy_sems : ring of `depth` DMA semaphores -> `depth` row DMAs in flight
    """
    base = pl.program_id(0) * b_tile

    def _start(r, row):
        pltpu.make_async_copy(
            z_hbm.at[pl.ds(row, 1), :],      # (1, nrep_pad) row in HBM
            o_ref.at[pl.ds(r, 1), :],        # (1, nrep_pad) row of the block
            copy_sems.at[r % depth],
        ).start()

    def _wait_oldest(r):
        # Only the transfer shape and the semaphore matter for a wait; use a
        # dummy src row so no SMEM index read happens right after a wait.
        pltpu.make_async_copy(
            z_hbm.at[pl.ds(0, 1), :],
            o_ref.at[pl.ds(r - depth, 1), :],
            copy_sems.at[r % depth],          # == (r - depth) % depth
        ).wait()

    # Prime the DMA ring (depth is a small static int -> unrolled).
    for r in range(depth):
        _start(r, idx_ref[base + r])

    # Steady state: read next index (hoisted above the wait), retire the
    # oldest in-flight copy, issue the next one.
    def _step(r, carry):
        row = idx_ref[base + r]      # SMEM read hoisted above .wait()
        _wait_oldest(r)
        _start(r, row)
        return carry

    lax.fori_loop(depth, b_tile, _step, 0, unroll=4)

    # Drain the ring: all rows landed before the block is written back.
    for r in range(b_tile - depth, b_tile):
        pltpu.make_async_copy(
            z_hbm.at[pl.ds(0, 1), :],
            o_ref.at[pl.ds(r, 1), :],
            copy_sems.at[r % depth],
        ).wait()


# ----------------------------------------------------------------------------
# pallas_call wrapper
# ----------------------------------------------------------------------------
@functools.partial(jax.jit, static_argnames=("b_tile", "depth", "use_vmem_table"))
def _gather_rows(z_table, idx, *, b_tile, depth, use_vmem_table):
    nsample, nrep_pad = z_table.shape
    batch = idx.shape[0]
    padded = _round_up(batch, b_tile)

    # Clamp untrusted indices (an OOB row DMA would fault or read garbage);
    # padding rows gather row 0 and are sliced off below.
    # TODO(synk): PyTorch raises on out-of-range indices; here they are clamped.
    idx = jnp.clip(idx.astype(jnp.int32), 0, nsample - 1)
    if padded != batch:
        idx = jnp.concatenate([idx, jnp.zeros((padded - batch,), jnp.int32)])

    itemsize = jnp.dtype(z_table.dtype).itemsize
    out_spec = pl.BlockSpec((b_tile, nrep_pad), lambda t, idx_ref: (t, 0))

    if use_vmem_table:
        kernel = functools.partial(_gather_kernel_vmem, b_tile=b_tile)
        # Constant block index across the grid -> table DMA'd into VMEM once
        # and kept resident; the gather is pure vector loads/stores.
        in_specs = [pl.BlockSpec((nsample, nrep_pad), lambda t, idx_ref: (0, 0))]
        scratch_shapes = []
        bytes_accessed = (nsample * nrep_pad + 2 * padded * nrep_pad) * itemsize
    else:
        kernel = functools.partial(_gather_kernel_hbm, b_tile=b_tile, depth=depth)
        in_specs = [pl.BlockSpec(memory_space=pl.ANY)]        # z stays in HBM
        scratch_shapes = [pltpu.SemaphoreType.DMA((depth,))]
        bytes_accessed = 2 * padded * nrep_pad * itemsize

    out = pl.pallas_call(
        kernel,
        out_shape=jax.ShapeDtypeStruct((padded, nrep_pad), z_table.dtype),
        grid_spec=pltpu.PrefetchScalarGridSpec(
            num_scalar_prefetch=1,                       # idx -> SMEM
            grid=(padded // b_tile,),
            in_specs=in_specs,
            out_specs=out_spec,
            scratch_shapes=scratch_shapes,
        ),
        compiler_params=pltpu.CompilerParams(
            # rows are independent: lets v7x shard the batch axis over 2 TCs
            dimension_semantics=("parallel",),
        ),
        cost_estimate=pl.CostEstimate(
            flops=0, transcendentals=0, bytes_accessed=bytes_accessed),
    )(idx, z_table)
    return out[:batch] if padded != batch else out


# ----------------------------------------------------------------------------
# Module
# ----------------------------------------------------------------------------
class RepresentationLayer:
    """JAX/Pallas port of the PyTorch RepresentationLayer forward pass."""

    _MAX_TILE = 256                        # max rows per output block
    _DMA_DEPTH = 16                        # in-flight row DMAs (HBM path)
    # Conservative VMEM budgets safe on v5e (16 MiB scoped default),
    # v6e (32/128 MiB) and v7x (32/64 MiB):
    _TABLE_VMEM_BUDGET = 4 * 1024 * 1024   # table kept resident below this
    _OUT_VMEM_BUDGET = 4 * 1024 * 1024     # double-buffered output blocks

    def __init__(self, nrep, nsample, init=(0.0, 1.0), values=None, key=None):
        if values is None:
            self.nrep = int(nrep)
            self.nsample = int(nsample)
            self.mean, self.stddev = float(init[0]), float(init[1])
            if key is None:
                key = jax.random.PRNGKey(0)
            # matches torch.normal(mean, stddev, size=(nsample, nrep))
            self.z = self.mean + self.stddev * jax.random.normal(
                key, (self.nsample, self.nrep), dtype=jnp.float32)
        else:
            values = jnp.asarray(values, dtype=jnp.float32)
            self.nrep = int(values.shape[-1])
            self.nsample = int(values.shape[0])
            self.mean, self.stddev = None, None
            self.z = values

        # Lane-dense internal copy: nrep rounded up to a multiple of 128 so
        # every gathered row / output store is an unmasked full-lane access.
        # self.z stays unpadded (it is what forward(None) returns).
        self._nrep_pad = _round_up(self.nrep, 128)
        if self._nrep_pad != self.nrep:
            self._z_table = jnp.pad(
                self.z, ((0, 0), (0, self._nrep_pad - self.nrep)))
        else:
            self._z_table = self.z
        # TODO(synk): update()/rescale()/fix()/unfix()/zero_grad() are
        # training-time host-side parameter updates, not part of the forward
        # pass; not implemented as kernels.

    def forward(self, idx=None):
        if idx is None:
            # forward() with no index returns the full representation matrix.
            return self.z

        idx = jnp.asarray(idx)
        lead_shape = idx.shape
        flat = idx.reshape(-1).astype(jnp.int32)
        batch = int(flat.shape[0])
        if batch == 0:                       # empty index: no kernel launch
            return jnp.zeros(lead_shape + (self.nrep,), dtype=self.z.dtype)

        itemsize = jnp.dtype(self.z.dtype).itemsize
        # b_tile from the VMEM budget for the double-buffered output block,
        # capped at _MAX_TILE, always a multiple of 8 sublanes.
        cap = self._OUT_VMEM_BUDGET // (2 * self._nrep_pad * itemsize)
        tile_cap = max(8, min(self._MAX_TILE, (cap // 8) * 8))
        # Number of grid steps: keep padding waste < 8 rows per tile and give
        # v7x's two TensorCores >= 2 blocks once the batch is non-trivial.
        n_tiles = _cdiv(batch, tile_cap)
        if batch > 16:
            n_tiles = max(n_tiles, 2)
        b_tile = min(tile_cap, _round_up(_cdiv(batch, n_tiles), 8))
        depth = min(self._DMA_DEPTH, b_tile)

        table_bytes = self.nsample * self._nrep_pad * itemsize
        use_vmem_table = table_bytes <= self._TABLE_VMEM_BUDGET

        out = _gather_rows(self._z_table, flat, b_tile=b_tile, depth=depth,
                           use_vmem_table=use_vmem_table)
        if self._nrep_pad != self.nrep:
            out = out[:, : self.nrep]
        return out.reshape(lead_shape + (self.nrep,))

    def __call__(self, idx=None):
        return self.forward(idx)

    def __getitem__(self, idx):
        return self.forward(idx)


# ----------------------------------------------------------------------------
# Demo / self-test
# ----------------------------------------------------------------------------
if __name__ == "__main__":
    key = jax.random.PRNGKey(0)
    k_init, k_idx1, k_idx2, k_idx4, k_vals, k_idx5 = jax.random.split(key, 6)

    nsample, nrep = 64, 128
    layer = RepresentationLayer(nrep=nrep, nsample=nsample, init=(0.0, 1.0),
                                key=k_init)
    z_np = np.asarray(layer.z)

    # case 1: small batch, single tile (VMEM-resident fast path)
    idx1 = jax.random.randint(k_idx1, (8,), 0, nsample, dtype=jnp.int32)
    out1 = jax.block_until_ready(layer(idx1))
    assert out1.shape == (8, nrep)
    assert np.array_equal(np.asarray(out1), z_np[np.asarray(idx1)])

    # case 2: batch not a multiple of 8 -> padding + 2 grid steps
    idx2 = jax.random.randint(k_idx2, (20,), 0, nsample, dtype=jnp.int32)
    out2 = jax.block_until_ready(layer(idx2))
    assert out2.shape == (20, nrep)
    assert np.array_equal(np.asarray(out2), z_np[np.asarray(idx2)])

    # case 3: explicitly exercise the HBM DMA-ring path (large-table path)
    out3 = jax.block_until_ready(
        _gather_rows(layer._z_table, idx2, b_tile=16, depth=8,
                     use_vmem_table=False))
    assert out3.shape == (20, nrep)
    assert np.array_equal(np.asarray(out3), z_np[np.asarray(idx2)])

    # case 4: 2-D index array -> leading shape preserved
    idx4 = jax.random.randint(k_idx4, (2, 3), 0, nsample, dtype=jnp.int32)
    out4 = jax.block_until_ready(layer(idx4))
    assert out4.shape == (2, 3, nrep)
    assert np.array_equal(np.asarray(out4), z_np[np.asarray(idx4)])

    # case 5: values-initialized layer with nrep not a multiple of 128
    vals = jax.random.normal(k_vals, (40, 72), dtype=jnp.float32)
    layer2 = RepresentationLayer(72, 40, values=vals)
    idx5 = jax.random.randint(k_idx5, (5,), 0, 40, dtype=jnp.int32)
    out5 = jax.block_until_ready(layer2(idx5))
    assert out5.shape == (5, 72)
    assert np.array_equal(np.asarray(out5), np.asarray(vals)[np.asarray(idx5)])

    # forward(None) returns the whole table; a scalar index returns one row
    full = jax.block_until_ready(layer())
    assert full.shape == (nsample, nrep)
    row = jax.block_until_ready(layer(jnp.int32(3)))
    assert row.shape == (nrep,)
    assert np.array_equal(np.asarray(row), z_np[3])

    print("KERNEL_OK")
</pallas_src>

<mosaic_0001>
module attributes {stable_mosaic.version = 11 : i64} {
  func.func @_gather_kernel_vmem(%arg0: i32, %arg1: memref<8xi32, #tpu.memory_space<smem>>, %arg2: memref<64x128xf32, #tpu.memory_space<vmem>>, %arg3: memref<8x128xf32, #tpu.memory_space<vmem>>) attributes {dimension_semantics = [#tpu.dimension_semantics<parallel>], iteration_bounds = array<i64: 1>, scalar_prefetch = 1 : i64, scratch_operands = 0 : i64, tpu.core_type = #tpu.core_type<tc>, window_params = [{pipeline_mode = #tpu.pipeline_mode<synchronous>, transform_indices = @transform_0, window_bounds = array<i64: 64, 128>}, {transform_indices = @transform_1, window_bounds = array<i64: 8, 128>}]} {
    %c8_i32 = arith.constant 8 : i32
    %0 = arith.muli %arg0, %c8_i32 : i32
    %c0_i32 = arith.constant 0 : i32
    %1 = arith.addi %0, %c0_i32 : i32
    %2 = arith.index_cast %1 : i32 to index
    %3 = memref.load %arg1[%2] : memref<8xi32, #tpu.memory_space<smem>>
    %4 = arith.index_cast %3 : i32 to index
    %c0 = arith.constant 0 : index
    %5 = vector.load %arg2[%4, %c0] : memref<64x128xf32, #tpu.memory_space<vmem>>, vector<1x128xf32>
    %c0_0 = arith.constant 0 : index
    %c0_1 = arith.constant 0 : index
    %6 = vector.load %arg3[%c0_0, %c0_1] : memref<8x128xf32, #tpu.memory_space<vmem>>, vector<1x128xf32>
    tpu.vector_store %arg3[%c0_0, %c0_1], %5 {strides = array<i32>} : memref<8x128xf32, #tpu.memory_space<vmem>>, vector<1x128xf32>,
    %c1_i32 = arith.constant 1 : i32
    %7 = arith.addi %0, %c1_i32 : i32
    %8 = arith.index_cast %7 : i32 to index
    %9 = memref.load %arg1[%8] : memref<8xi32, #tpu.memory_space<smem>>
    %10 = arith.index_cast %9 : i32 to index
    %c0_2 = arith.constant 0 : index
    %11 = vector.load %arg2[%10, %c0_2] : memref<64x128xf32, #tpu.memory_space<vmem>>, vector<1x128xf32>
    %c1 = arith.constant 1 : index
    %c0_3 = arith.constant 0 : index
    %12 = vector.load %arg3[%c1, %c0_3] : memref<8x128xf32, #tpu.memory_space<vmem>>, vector<1x128xf32>
    tpu.vector_store %arg3[%c1, %c0_3], %11 {strides = array<i32>} : memref<8x128xf32, #tpu.memory_space<vmem>>, vector<1x128xf32>,
    %c2_i32 = arith.constant 2 : i32
    %13 = arith.addi %0, %c2_i32 : i32
    %14 = arith.index_cast %13 : i32 to index
    %15 = memref.load %arg1[%14] : memref<8xi32, #tpu.memory_space<smem>>
    %16 = arith.index_cast %15 : i32 to index
    %c0_4 = arith.constant 0 : index
    %17 = vector.load %arg2[%16, %c0_4] : memref<64x128xf32, #tpu.memory_space<vmem>>, vector<1x128xf32>
    %c2 = arith.constant 2 : index
    %c0_5 = arith.constant 0 : index
    %18 = vector.load %arg3[%c2, %c0_5] : memref<8x128xf32, #tpu.memory_space<vmem>>, vector<1x128xf32>
    tpu.vector_store %arg3[%c2, %c0_5], %17 {strides = array<i32>} : memref<8x128xf32, #tpu.memory_space<vmem>>, vector<1x128xf32>,
    %c3_i32 = arith.constant 3 : i32
    %19 = arith.addi %0, %c3_i32 : i32
    %20 = arith.index_cast %19 : i32 to index
    %21 = memref.load %arg1[%20] : memref<8xi32, #tpu.memory_space<smem>>
    %22 = arith.index_cast %21 : i32 to index
    %c0_6 = arith.constant 0 : index
    %23 = vector.load %arg2[%22, %c0_6] : memref<64x128xf32, #tpu.memory_space<vmem>>, vector<1x128xf32>
    %c3 = arith.constant 3 : index
    %c0_7 = arith.constant 0 : index
    %24 = vector.load %arg3[%c3, %c0_7] : memref<8x128xf32, #tpu.memory_space<vmem>>, vector<1x128xf32>
    tpu.vector_store %arg3[%c3, %c0_7], %23 {strides = array<i32>} : memref<8x128xf32, #tpu.memory_space<vmem>>, vector<1x128xf32>,
    %c4_i32 = arith.constant 4 : i32
    %25 = arith.addi %0, %c4_i32 : i32
    %26 = arith.index_cast %25 : i32 to index
    %27 = memref.load %arg1[%26] : memref<8xi32, #tpu.memory_space<smem>>
    %28 = arith.index_cast %27 : i32 to index
    %c0_8 = arith.constant 0 : index
    %29 = vector.load %arg2[%28, %c0_8] : memref<64x128xf32, #tpu.memory_space<vmem>>, vector<1x128xf32>
    %c4 = arith.constant 4 : index
    %c0_9 = arith.constant 0 : index
    %30 = vector.load %arg3[%c4, %c0_9] : memref<8x128xf32, #tpu.memory_space<vmem>>, vector<1x128xf32>
    tpu.vector_store %arg3[%c4, %c0_9], %29 {strides = array<i32>} : memref<8x128xf32, #tpu.memory_space<vmem>>, vector<1x128xf32>,
    %c5_i32 = arith.constant 5 : i32
    %31 = arith.addi %0, %c5_i32 : i32
    %32 = arith.index_cast %31 : i32 to index
    %33 = memref.load %arg1[%32] : memref<8xi32, #tpu.memory_space<smem>>
    %34 = arith.index_cast %33 : i32 to index
    %c0_10 = arith.constant 0 : index
    %35 = vector.load %arg2[%34, %c0_10] : memref<64x128xf32, #tpu.memory_space<vmem>>, vector<1x128xf32>
    %c5 = arith.constant 5 : index
    %c0_11 = arith.constant 0 : index
    %36 = vector.load %arg3[%c5, %c0_11] : memref<8x128xf32, #tpu.memory_space<vmem>>, vector<1x128xf32>
    tpu.vector_store %arg3[%c5, %c0_11], %35 {strides = array<i32>} : memref<8x128xf32, #tpu.memory_space<vmem>>, vector<1x128xf32>,
    %c6_i32 = arith.constant 6 : i32
    %37 = arith.addi %0, %c6_i32 : i32
    %38 = arith.index_cast %37 : i32 to index
    %39 = memref.load %arg1[%38] : memref<8xi32, #tpu.memory_space<smem>>
    %40 = arith.index_cast %39 : i32 to index
    %c0_12 = arith.constant 0 : index
    %41 = vector.load %arg2[%40, %c0_12] : memref<64x128xf32, #tpu.memory_space<vmem>>, vector<1x128xf32>
    %c6 = arith.constant 6 : index
    %c0_13 = arith.constant 0 : index
    %42 = vector.load %arg3[%c6, %c0_13] : memref<8x128xf32, #tpu.memory_space<vmem>>, vector<1x128xf32>
    tpu.vector_store %arg3[%c6, %c0_13], %41 {strides = array<i32>} : memref<8x128xf32, #tpu.memory_space<vmem>>, vector<1x128xf32>,
    %c7_i32 = arith.constant 7 : i32
    %43 = arith.addi %0, %c7_i32 : i32
    %44 = arith.index_cast %43 : i32 to index
    %45 = memref.load %arg1[%44] : memref<8xi32, #tpu.memory_space<smem>>
    %46 = arith.index_cast %45 : i32 to index
    %c0_14 = arith.constant 0 : index
    %47 = vector.load %arg2[%46, %c0_14] : memref<64x128xf32, #tpu.memory_space<vmem>>, vector<1x128xf32>
    %c7 = arith.constant 7 : index
    %c0_15 = arith.constant 0 : index
    %48 = vector.load %arg3[%c7, %c0_15] : memref<8x128xf32, #tpu.memory_space<vmem>>, vector<1x128xf32>
    tpu.vector_store %arg3[%c7, %c0_15], %47 {strides = array<i32>} : memref<8x128xf32, #tpu.memory_space<vmem>>, vector<1x128xf32>,
    return
  }
  func.func @transform_0(%arg0: i32, %arg1: memref<8xi32, #tpu.memory_space<smem>>) -> (i32, i32) {
    %c0_i32 = arith.constant 0 : i32
    %c0_i32_0 = arith.constant 0 : i32
    %c0_i32_1 = arith.constant 0 : i32
    return %c0_i32, %c0_i32_0 : i32, i32
  }
  func.func @transform_1(%arg0: i32, %arg1: memref<8xi32, #tpu.memory_space<smem>>) -> (i32, i32) {
    %c0_i32 = arith.constant 0 : i32
    %c0_i32_0 = arith.constant 0 : i32
    return %arg0, %c0_i32 : i32, i32
  }
}

</mosaic_0001>

<bundles_post_ra>
// kernel: _gather_rows.1
= control target key start
LH: loop header
LB: loop body
LE: loop exit
PB: predicated region body
PF: predicated region fallthrough
CT: control target
= control target key end

     0   :  { %s177_s12 = smov [#allocation3]   ;;  %s206_s0 = inlined_call_operand.vmem [shape: s32[8], index: 0, kind: input, shape index: {}]   ;;  %s207_s1 = inlined_call_operand.hbm [shape: f32[64,128], index: 1, kind: input, shape index: {}]   ;;  %s208_s2 = inlined_call_operand.hbm [shape: f32[8,128], index: 2, kind: output, shape index: {}]  }
   0x1   :  { %s8_s11 = sshll.u32 %s206_s0, 4  ;;  %s9_s11 = int_to_ptr.vmem [resolvable:$true] %s8_s11 }
   0x2   :  { %11 = dma.vmem_to_smem %s9_s11, 16, %s177_s12, [#allocation2] }
   0x3   :  { %171 = dma.done.wait [#allocation2], 16 }
   0x4   :  { %172 = vsyncadd [#allocation2], 4294967280 }
   0x5   :  { %14 = sfence }
   0x6   :  { %15 = vsyncpa [#allocation5], 0 }
   0x7   :  { %16 = vsyncpa [#allocation6], 0  ;;  %s21_s15 = sshll.u32 %s207_s1, 4  ;;  %s178_s16 = smov [#allocation4]   ;;  %s22_s15 = int_to_ptr.hbm [resolvable:$true] %s21_s15 }
   0x8   :  { %s23_s17 = sshll.u32 %s178_s16, 4  ;;  %s179_s18 = smov 128   ;;  %s24_s17 = int_to_ptr.vmem [resolvable:$true] %s23_s17 }
   0x9   :  { %s180_s19 = smov 8  }
   0xa   :  { %29 = dma.hbm_to_vmem [thread:$0]  %s22_s15, 1024, %s24_s17, [#allocation5], %s179_s18, %s179_s18, %s180_s19  }
   0xb   :  { %173 = dma.done.wait [#allocation5], 1024  }
   0xc   :  { %174 = vsyncadd [#allocation5], 4294966272  ;;  %s35_s0 = sld [smem:[#allocation3]]  ;;  %s181_s29 = smov [#allocation7]  }
   0xd   :  { %s99_s20 = sld [smem:[#allocation3 + $0x1]]  ;;  %s79_s30 = sshll.u32 %s181_s29, 4  ;;  %s80_s30 = int_to_ptr.vmem [resolvable:$true] %s79_s30 }
   0xe   :  { %s100_s21 = sld [smem:[#allocation3 + $0x2]]  ;;  %s81_s6 = sshll.u32 %s208_s2, 4  ;;  %s82_s6 = int_to_ptr.hbm [resolvable:$true] %s81_s6 }
   0xf   :  { %s101_s22 = sld [smem:[#allocation3 + $0x3]] }
  0x10   :  { %s102_s23 = sld [smem:[#allocation3 + $0x4]] }
  0x11   :  { %s103_s24 = sld [smem:[#allocation3 + $0x5]] }
  0x12   :  { %s104_s25 = sld [smem:[#allocation3 + $0x6]]  ;;  %s36_s26 = scalar_lea.vmem [#allocation4], %s35_s0 }
  0x13   :  { %v37_v0 = vld [vmem:[%s36_s26] sm:$0x1]  ;;  %s105_s27 = sld [smem:[#allocation3 + $0x7]]  ;;  %s41_s1 = scalar_lea.vmem [#allocation4], %s99_s20 }
  0x14   :  { %38 = vst [vmem:[#allocation7] sm:$0x1] %v37_v0  ;;  %v42_v1 = vld [vmem:[%s41_s1] sm:$0x1]  ;;  %s46_s28 = scalar_lea.vmem [#allocation4], %s100_s21 }
  0x15   :  { %43 = vst [vmem:[#allocation7 + $0x1] sm:$0x1] %v42_v1  ;;  %v47_v2 = vld [vmem:[%s46_s28] sm:$0x1]  ;;  %s51_s3 = scalar_lea.vmem [#allocation4], %s101_s22 }
  0x16   :  { %48 = vst [vmem:[#allocation7 + $0x2] sm:$0x1] %v47_v2  ;;  %v52_v3 = vld [vmem:[%s51_s3] sm:$0x1]  ;;  %s56_s7 = scalar_lea.vmem [#allocation4], %s102_s23 }
  0x17   :  { %53 = vst [vmem:[#allocation7 + $0x3] sm:$0x1] %v52_v3  ;;  %v57_v4 = vld [vmem:[%s56_s7] sm:$0x1]  ;;  %s61_s8 = scalar_lea.vmem [#allocation4], %s103_s24 }
  0x18   :  { %58 = vst [vmem:[#allocation7 + $0x4] sm:$0x1] %v57_v4  ;;  %v62_v5 = vld [vmem:[%s61_s8] sm:$0x1]  ;;  %s66_s9 = scalar_lea.vmem [#allocation4], %s104_s25 }
  0x19   :  { %63 = vst [vmem:[#allocation7 + $0x5] sm:$0x1] %v62_v5  ;;  %v67_v6 = vld [vmem:[%s66_s9] sm:$0x1]  ;;  %s71_s10 = scalar_lea.vmem [#allocation4], %s105_s27 }
  0x1a   :  { %68 = vst [vmem:[#allocation7 + $0x6] sm:$0x1] %v67_v6  ;;  %v72_v7 = vld [vmem:[%s71_s10] sm:$0x1] }
  0x1b   :  { %73 = vst [vmem:[#allocation7 + $0x7] sm:$0x1] %v72_v7 }
  0x1c   :  { %84 = dma.vmem_to_hbm [thread:$0]  %s80_s30, 128, %s82_s6, [#allocation6]  }
  0x1d   :  { %175 = dma.done.wait [#allocation6], 128  }
  0x1e   :  { %176 = vsyncadd [#allocation6], 4294967168 }
  0x1f   :  { %89 = vsyncpa [#allocation5], 1 }
  0x20   :  { %90 = vsyncpa [#allocation6], 1 }

</bundles_post_ra>
